<compile_context>
chip_gen: v5e
topology: v5e:2x2
jax: 0.10.0
libtpu: 0.0.40
codegen_flags: <defaults>
</compile_context>

<pallas_src>
import math

import jax
import jax.numpy as jnp
from jax import lax
from jax.experimental import pallas as pl
from jax.experimental.pallas import tpu as pltpu  # noqa: F401  (TPU backend assumed)


# ---- configuration (mirrors the PyTorch constructor args) ------------------
NUM_HEADS = 2
QUERY_EMB_DIM = 32          # E ; 4E = 128 == one full lane tile
ATTN_MLP_HIDDEN = 64
FF_MLP_HIDDEN = 64
NUM_ATTN_LAYERS = 1
NUM_WEIGHT_TIED_LAYERS = 1
FIX_KEYS_IN_ATTN = False
USE_FF = True
DROPOUT_RATE = 0.0  # TODO(synk): dropout omitted (eval semantics, rate = 0)

# mirror the PyTorch __init__: no weight-tied layers => one extra regular layer
_EFFECTIVE_ATTN_LAYERS = NUM_ATTN_LAYERS + (1 if NUM_WEIGHT_TIED_LAYERS == 0 else 0)
_NUM_BLOCKS = _EFFECTIVE_ATTN_LAYERS + (1 if NUM_WEIGHT_TIED_LAYERS > 0 else 0)

LANES = 128

# weight-slab row layout (bf16): per block [w_attn(E) | w1(E) | w2(AH)], then FF
_WROWS_PER_BLOCK = 2 * QUERY_EMB_DIM + ATTN_MLP_HIDDEN            # 128
_W_FF_OFF = _NUM_BLOCKS * _WROWS_PER_BLOCK                        # 256
_W_TOTAL = _W_FF_OFF + ((QUERY_EMB_DIM + FF_MLP_HIDDEN) if USE_FF else 0)  # 352


def _r8(n):
    return ((n + 7) // 8) * 8


def _const_layout(T, D):
    """Row offsets inside the f32 consts slab."""
    r_data = 0
    r_task = _r8(D)
    r_mask = r_task + _r8(T)
    r_small = r_mask + _r8(T)               # 8 rows per attention block
    r_ff = r_small + 8 * _NUM_BLOCKS        # 8 rows for FF biases
    n_rows = r_ff + (8 if USE_FF else 0)
    return r_data, r_task, r_mask, r_small, r_ff, n_rows


# ---------------------------------------------------------------------------
# Single fused kernel for the whole Graph forward pass.
# ---------------------------------------------------------------------------
def _make_kernel(T, D):
    E = QUERY_EMB_DIM
    H = NUM_HEADS
    dh = E // H
    AH = ATTN_MLP_HIDDEN
    FH = FF_MLP_HIDDEN
    S = T + D
    r_data, r_task, r_mask, r_small, r_ff, _ = _const_layout(T, D)
    out_task_row = 0
    out_pred_row = _r8(T)

    def layer_norm(x, g, b):
        mu = jnp.mean(x, axis=-1, keepdims=True)
        var = jnp.mean(jnp.square(x - mu), axis=-1, keepdims=True)
        return (x - mu) * lax.rsqrt(var + 1e-5) * g + b

    def kernel(c_ref, w_ref, o_ref):
        data = c_ref[r_data:r_data + D, 0:E]              # (D, E)  f32
        task = c_ref[r_task:r_task + T, 0:E]              # (T, E)  f32
        mask = c_ref[r_mask:r_mask + T, 0:S]              # (T, S)  additive bias
        data_b = data.astype(jnp.bfloat16)

        def attn_block(keys, queries, blk):
            wbase = blk * _WROWS_PER_BLOCK
            sbase = r_small + 8 * blk
            w_attn = w_ref[wbase:wbase + E, :]                           # (E, 4E) bf16
            w1 = w_ref[wbase + E:wbase + 2 * E, 0:AH]                    # (E, AH) bf16
            w2 = w_ref[wbase + 2 * E:wbase + 2 * E + AH, 0:E]            # (AH, E) bf16
            b_attn = c_ref[sbase:sbase + 1, :]                           # (1, 4E) f32
            b1 = c_ref[sbase + 1:sbase + 2, 0:AH]
            b2 = c_ref[sbase + 2:sbase + 3, 0:E]
            ln1_g = c_ref[sbase + 3:sbase + 4, 0:E]
            ln1_b = c_ref[sbase + 4:sbase + 5, 0:E]
            ln2_g = c_ref[sbase + 5:sbase + 6, 0:E]
            ln2_b = c_ref[sbase + 6:sbase + 7, 0:E]

            # Full lane-dense (N = 128) projections; slice the OUTPUTS.
            # (Wq / bq were pre-scaled by 1/sqrt(dh) at pack time.)
            q_proj = jnp.dot(queries.astype(jnp.bfloat16), w_attn,
                             preferred_element_type=jnp.float32) + b_attn   # (T, 4E)
            k_proj = jnp.dot(keys.astype(jnp.bfloat16), w_attn,
                             preferred_element_type=jnp.float32) + b_attn   # (S, 4E)

            # Both heads in one program; head-concat folded into per-head
            # partial out-projection sums (no in-kernel concatenation).
            acc = None
            for h in range(H):
                q_h = q_proj[:, h * dh:(h + 1) * dh]
                k_h = k_proj[:, E + h * dh:E + (h + 1) * dh]
                v_h = k_proj[:, 2 * E + h * dh:2 * E + (h + 1) * dh]
                s = lax.dot_general(
                    q_h.astype(jnp.bfloat16), k_h.astype(jnp.bfloat16),
                    (((1,), (1,)), ((), ())),
                    preferred_element_type=jnp.float32) + mask              # (T, S)
                p = jnp.exp(s - jnp.max(s, axis=-1, keepdims=True))
                inv = pl.reciprocal(jnp.sum(p, axis=-1, keepdims=True), approx=True)
                o_h = jnp.dot(p.astype(jnp.bfloat16), v_h.astype(jnp.bfloat16),
                              preferred_element_type=jnp.float32) * inv      # (T, dh)
                wo_h = w_attn[h * dh:(h + 1) * dh, 3 * E:4 * E]              # (dh, E)
                contrib = jnp.dot(o_h.astype(jnp.bfloat16), wo_h,
                                  preferred_element_type=jnp.float32)
                acc = contrib if acc is None else acc + contrib
            o = acc + b_attn[:, 3 * E:4 * E]

            x = layer_norm(queries + o, ln1_g, ln1_b)
            hmid = jnp.maximum(
                jnp.dot(x.astype(jnp.bfloat16), w1,
                        preferred_element_type=jnp.float32) + b1, 0.0)
            y = jnp.dot(hmid.astype(jnp.bfloat16), w2,
                        preferred_element_type=jnp.float32) + b2
            return layer_norm(x + y, ln2_g, ln2_b)

        # regular (non-tied) layers: keys built once from ORIGINAL task embs
        keys = jnp.concatenate([task, data], axis=0)
        blk = 0
        for _ in range(_EFFECTIVE_ATTN_LAYERS):
            task = attn_block(keys, task, blk)
            blk += 1

        # weight-tied iterations (shared weights = last block)
        tied_blk = _NUM_BLOCKS - 1
        for _ in range(NUM_WEIGHT_TIED_LAYERS):
            if not FIX_KEYS_IN_ATTN:
                keys = jnp.concatenate([task, data], axis=0)
            task = attn_block(keys, task, tied_blk)

        if USE_FF:
            ffw1 = w_ref[_W_FF_OFF:_W_FF_OFF + E, 0:FH]                  # (E, FH)
            ffw2 = w_ref[_W_FF_OFF + E:_W_FF_OFF + E + FH, :]            # (FH, 128) zero-padded
            ffb1 = c_ref[r_ff:r_ff + 1, 0:FH]
            ffb2 = c_ref[r_ff + 1:r_ff + 2, :]                           # (1, 128) zero-padded
            hmid = jnp.maximum(
                jnp.dot(task.astype(jnp.bfloat16), ffw1,
                        preferred_element_type=jnp.float32) + ffb1, 0.0)
            # zero-padded ff_w2 makes the output naturally lane-dense (T, 128)
            task_pad = jnp.dot(hmid.astype(jnp.bfloat16), ffw2,
                               preferred_element_type=jnp.float32) + ffb2
        else:
            task_pad = jnp.concatenate(
                [task, jnp.zeros((T, LANES - E), jnp.float32)], axis=1)

        # lane-dense store of task_out (rows 0:T of the output slab)
        o_ref[out_task_row:out_task_row + T, :] = task_pad

        # task_preds = data @ task^T — contract the feature dim in-kernel,
        # zero-pad the task rows to 128 so the output (D, 128) is lane-dense.
        task_rows = jnp.concatenate(
            [task_pad[:, 0:E], jnp.zeros((LANES - T, E), jnp.float32)], axis=0)
        preds = lax.dot_general(
            data_b, task_rows.astype(jnp.bfloat16),
            (((1,), (1,)), ((), ())),
            preferred_element_type=jnp.float32)                          # (D, 128)
        o_ref[out_pred_row:out_pred_row + D, :] = preds

    return kernel


# ---------------------------------------------------------------------------
# Wrapper: pack everything into 2 lane-dense slabs, one pallas_call, unpack.
# ---------------------------------------------------------------------------
@jax.jit
def graph_forward(params, _data_embs, _task_embs,
                  task_self_attn_mask, data_task_attn_mask):
    E = QUERY_EMB_DIM
    AH = ATTN_MLP_HIDDEN
    FH = FF_MLP_HIDDEN
    dh = E // NUM_HEADS
    scale = 1.0 / math.sqrt(dh)

    T = _task_embs.shape[0]
    D = _data_embs.shape[0]
    S = T + D

    data = _data_embs.astype(jnp.float32)
    task = _task_embs.astype(jnp.float32)

    # task_attn_mask = ~vstack((task_self, data_task)).T ; True => disallowed.
    allowed = jnp.concatenate([task_self_attn_mask, data_task_attn_mask], axis=0).T
    mask_bias = jnp.where(allowed, 0.0, -1e9).astype(jnp.float32)        # (T, S)

    r_data, r_task, r_mask, r_small, r_ff, n_const_rows = _const_layout(T, D)

    # ---- consts slab (f32) -------------------------------------------------
    consts = jnp.zeros((n_const_rows, LANES), jnp.float32)
    consts = consts.at[r_data:r_data + D, 0:E].set(data)
    consts = consts.at[r_task:r_task + T, 0:E].set(task)
    consts = consts.at[r_mask:r_mask + T, 0:S].set(mask_bias)

    # ---- weight slab (bf16) ------------------------------------------------
    weights = jnp.zeros((_W_TOTAL, LANES), jnp.float32)

    def blk_params(i):
        if i < _EFFECTIVE_ATTN_LAYERS:
            return params["attn_layers"][i]
        return params["weight_tied"]

    for b in range(_NUM_BLOCKS):
        p = blk_params(b)
        wbase = b * _WROWS_PER_BLOCK
        sbase = r_small + 8 * b
        w_attn = jnp.concatenate(
            [p["wq"] * scale, p["wk"], p["wv"], p["wo"]], axis=1)        # (E, 4E)
        b_attn = jnp.concatenate(
            [p["bq"] * scale, p["bk"], p["bv"], p["bo"]])[None, :]       # (1, 4E)
        weights = weights.at[wbase:wbase + E, :].set(w_attn)
        weights = weights.at[wbase + E:wbase + 2 * E, 0:AH].set(p["w1"])
        weights = weights.at[wbase + 2 * E:wbase + 2 * E + AH, 0:E].set(p["w2"])
        consts = consts.at[sbase:sbase + 1, :].set(b_attn)
        consts = consts.at[sbase + 1, 0:AH].set(p["b1"])
        consts = consts.at[sbase + 2, 0:E].set(p["b2"])
        consts = consts.at[sbase + 3, 0:E].set(p["ln1_g"])
        consts = consts.at[sbase + 4, 0:E].set(p["ln1_b"])
        consts = consts.at[sbase + 5, 0:E].set(p["ln2_g"])
        consts = consts.at[sbase + 6, 0:E].set(p["ln2_b"])

    if USE_FF:
        fbase = _W_FF_OFF
        weights = weights.at[fbase:fbase + E, 0:FH].set(params["ff_w1"])
        weights = weights.at[fbase + E:fbase + E + FH, 0:E].set(params["ff_w2"])
        consts = consts.at[r_ff, 0:FH].set(params["ff_b1"])
        consts = consts.at[r_ff + 1, 0:E].set(params["ff_b2"])

    weights = weights.astype(jnp.bfloat16)

    out_rows = _r8(T) + _r8(D)
    kernel = _make_kernel(T, D)

    out_slab = pl.pallas_call(
        kernel,
        out_shape=jax.ShapeDtypeStruct((out_rows, LANES), jnp.float32),
        in_specs=[
            pl.BlockSpec((n_const_rows, LANES), lambda: (0, 0)),
            pl.BlockSpec((_W_TOTAL, LANES), lambda: (0, 0)),
        ],
        out_specs=pl.BlockSpec((out_rows, LANES), lambda: (0, 0)),
    )(consts, weights)

    task_out = out_slab[0:T, 0:E]
    task_preds = out_slab[_r8(T):_r8(T) + D, 0:T]
    return _data_embs, task_out, task_preds


# ---------------------------------------------------------------------------
# Deterministic parameter init
# ---------------------------------------------------------------------------
def _init_attn_block(key, emb, hidden):
    ks = jax.random.split(key, 6)
    w = lambda k, s: (jax.random.normal(k, s, jnp.float32) * 0.02)
    return {
        "wq": w(ks[0], (emb, emb)),   "bq": jnp.zeros((emb,), jnp.float32),
        "wk": w(ks[1], (emb, emb)),   "bk": jnp.zeros((emb,), jnp.float32),
        "wv": w(ks[2], (emb, emb)),   "bv": jnp.zeros((emb,), jnp.float32),
        "wo": w(ks[3], (emb, emb)),   "bo": jnp.zeros((emb,), jnp.float32),
        "ln1_g": jnp.ones((emb,), jnp.float32), "ln1_b": jnp.zeros((emb,), jnp.float32),
        "w1": w(ks[4], (emb, hidden)), "b1": jnp.zeros((hidden,), jnp.float32),
        "w2": w(ks[5], (hidden, emb)), "b2": jnp.zeros((emb,), jnp.float32),
        "ln2_g": jnp.ones((emb,), jnp.float32), "ln2_b": jnp.zeros((emb,), jnp.float32),
    }


def init_params(key):
    keys = jax.random.split(key, _EFFECTIVE_ATTN_LAYERS + 3)
    params = {
        "attn_layers": [
            _init_attn_block(keys[i], QUERY_EMB_DIM, ATTN_MLP_HIDDEN)
            for i in range(_EFFECTIVE_ATTN_LAYERS)
        ],
    }
    if NUM_WEIGHT_TIED_LAYERS > 0:
        params["weight_tied"] = _init_attn_block(
            keys[_EFFECTIVE_ATTN_LAYERS], QUERY_EMB_DIM, ATTN_MLP_HIDDEN)
    if USE_FF:
        params["ff_w1"] = jax.random.normal(
            keys[-2], (QUERY_EMB_DIM, FF_MLP_HIDDEN), jnp.float32) * 0.02
        params["ff_b1"] = jnp.zeros((FF_MLP_HIDDEN,), jnp.float32)
        params["ff_w2"] = jax.random.normal(
            keys[-1], (FF_MLP_HIDDEN, QUERY_EMB_DIM), jnp.float32) * 0.02
        params["ff_b2"] = jnp.zeros((QUERY_EMB_DIM,), jnp.float32)
    return params


# ---------------------------------------------------------------------------
if __name__ == "__main__":
    T = 8    # number of task embeddings
    D = 16   # number of data embeddings
    E = QUERY_EMB_DIM

    root = jax.random.PRNGKey(0)
    k_data, k_task, k_mask, k_params = jax.random.split(root, 4)

    data_embs = jax.random.normal(k_data, (D, E), jnp.float32)
    task_embs = jax.random.normal(k_task, (T, E), jnp.float32)
    # mask convention follows the PyTorch code: True = attention allowed
    task_self_attn_mask = jnp.eye(T, dtype=bool)                     # (T, T)
    data_task_attn_mask = jax.random.bernoulli(k_mask, 0.7, (D, T))  # (D, T)

    params = init_params(k_params)

    out_data, out_task, task_preds = graph_forward(
        params, data_embs, task_embs, task_self_attn_mask, data_task_attn_mask)

    jax.block_until_ready((out_data, out_task, task_preds))
    assert out_data.shape == (D, E)
    assert out_task.shape == (T, E)
    assert task_preds.shape == (D, T)
    assert bool(jnp.all(jnp.isfinite(out_task)))
    assert bool(jnp.all(jnp.isfinite(task_preds)))
    print("KERNEL_OK")
</pallas_src>

<mosaic_0001>
module attributes {stable_mosaic.version = 11 : i64} {
  func.func @kernel(%arg0: memref<56x128xf32, #tpu.memory_space<vmem>>, %arg1: memref<352x128xbf16, #tpu.memory_space<vmem>>, %arg2: memref<24x128xf32, #tpu.memory_space<vmem>>) attributes {dimension_semantics = [], scalar_prefetch = 0 : i64, scratch_operands = 0 : i64, tpu.core_type = #tpu.core_type<tc>} {
    %c0 = arith.constant 0 : index
    %c0_0 = arith.constant 0 : index
    %0 = vector.load %arg0[%c0, %c0_0] : memref<56x128xf32, #tpu.memory_space<vmem>>, vector<16x32xf32>
    %c16 = arith.constant 16 : index
    %c0_1 = arith.constant 0 : index
    %1 = vector.load %arg0[%c16, %c0_1] : memref<56x128xf32, #tpu.memory_space<vmem>>, vector<8x32xf32>
    %c24 = arith.constant 24 : index
    %c0_2 = arith.constant 0 : index
    %2 = vector.load %arg0[%c24, %c0_2] : memref<56x128xf32, #tpu.memory_space<vmem>>, vector<8x24xf32>
    %3 = arith.truncf %0 : vector<16x32xf32> to vector<16x32xbf16>
    %4 = tpu.concatenate %1, %0 in 0 : vector<8x32xf32>, vector<16x32xf32> -> vector<24x32xf32>
    %c0_3 = arith.constant 0 : index
    %c0_4 = arith.constant 0 : index
    %5 = vector.load %arg1[%c0_3, %c0_4] : memref<352x128xbf16, #tpu.memory_space<vmem>>, vector<32x128xbf16>
    %c32 = arith.constant 32 : index
    %c0_5 = arith.constant 0 : index
    %6 = vector.load %arg1[%c32, %c0_5] : memref<352x128xbf16, #tpu.memory_space<vmem>>, vector<32x64xbf16>
    %c64 = arith.constant 64 : index
    %c0_6 = arith.constant 0 : index
    %7 = vector.load %arg1[%c64, %c0_6] : memref<352x128xbf16, #tpu.memory_space<vmem>>, vector<64x32xbf16>
    %c32_7 = arith.constant 32 : index
    %c0_8 = arith.constant 0 : index
    %8 = vector.load %arg0[%c32_7, %c0_8] : memref<56x128xf32, #tpu.memory_space<vmem>>, vector<1x128xf32>
    %c33 = arith.constant 33 : index
    %c0_9 = arith.constant 0 : index
    %9 = vector.load %arg0[%c33, %c0_9] : memref<56x128xf32, #tpu.memory_space<vmem>>, vector<1x64xf32>
    %c34 = arith.constant 34 : index
    %c0_10 = arith.constant 0 : index
    %10 = vector.load %arg0[%c34, %c0_10] : memref<56x128xf32, #tpu.memory_space<vmem>>, vector<1x32xf32>
    %c35 = arith.constant 35 : index
    %c0_11 = arith.constant 0 : index
    %11 = vector.load %arg0[%c35, %c0_11] : memref<56x128xf32, #tpu.memory_space<vmem>>, vector<1x32xf32>
    %c36 = arith.constant 36 : index
    %c0_12 = arith.constant 0 : index
    %12 = vector.load %arg0[%c36, %c0_12] : memref<56x128xf32, #tpu.memory_space<vmem>>, vector<1x32xf32>
    %c37 = arith.constant 37 : index
    %c0_13 = arith.constant 0 : index
    %13 = vector.load %arg0[%c37, %c0_13] : memref<56x128xf32, #tpu.memory_space<vmem>>, vector<1x32xf32>
    %c38 = arith.constant 38 : index
    %c0_14 = arith.constant 0 : index
    %14 = vector.load %arg0[%c38, %c0_14] : memref<56x128xf32, #tpu.memory_space<vmem>>, vector<1x32xf32>
    %15 = arith.truncf %1 : vector<8x32xf32> to vector<8x32xbf16>
    %cst = arith.constant dense<0.000000e+00> : vector<8x128xf32>
    %16 = tpu.matmul %15, %5, %cst {dimension_numbers = #tpu.dot_dimension_numbers<[1], [0], [0], [1], [0, 0, 1, 1], [], []>} : vector<8x32xbf16>, vector<32x128xbf16>, vector<8x128xf32> -> vector<8x128xf32>
    %17 = vector.broadcast %8 : vector<1x128xf32> to vector<8x128xf32>
    %18 = arith.addf %16, %17 : vector<8x128xf32>
    %19 = arith.truncf %4 : vector<24x32xf32> to vector<24x32xbf16>
    %cst_15 = arith.constant dense<0.000000e+00> : vector<24x128xf32>
    %20 = tpu.matmul %19, %5, %cst_15 {dimension_numbers = #tpu.dot_dimension_numbers<[1], [0], [0], [1], [0, 0, 1, 1], [], []>} : vector<24x32xbf16>, vector<32x128xbf16>, vector<24x128xf32> -> vector<24x128xf32>
    %21 = vector.broadcast %8 : vector<1x128xf32> to vector<24x128xf32>
    %22 = arith.addf %20, %21 : vector<24x128xf32>
    %23 = vector.extract_strided_slice %18 {offsets = [0, 0], sizes = [8, 16], strides = [1, 1]} : vector<8x128xf32> to vector<8x16xf32>
    %24 = vector.extract_strided_slice %22 {offsets = [0, 32], sizes = [24, 16], strides = [1, 1]} : vector<24x128xf32> to vector<24x16xf32>
    %25 = vector.extract_strided_slice %22 {offsets = [0, 64], sizes = [24, 16], strides = [1, 1]} : vector<24x128xf32> to vector<24x16xf32>
    %26 = arith.truncf %23 : vector<8x16xf32> to vector<8x16xbf16>
    %27 = arith.truncf %24 : vector<24x16xf32> to vector<24x16xbf16>
    %cst_16 = arith.constant dense<0.000000e+00> : vector<8x24xf32>
    %28 = tpu.matmul %26, %27, %cst_16 {dimension_numbers = #tpu.dot_dimension_numbers<[1], [1], [0], [0], [0, 0, 1, 0], [], []>} : vector<8x16xbf16>, vector<24x16xbf16>, vector<8x24xf32> -> vector<8x24xf32>
    %29 = arith.addf %28, %2 : vector<8x24xf32>
    %cst_17 = arith.constant dense<0xFF800000> : vector<8xf32>
    %30 = vector.multi_reduction <maximumf>, %29, %cst_17 [1] : vector<8x24xf32> to vector<8xf32>
    %31 = vector.shape_cast %30 : vector<8xf32> to vector<8x1xf32>
    %32 = vector.broadcast %31 : vector<8x1xf32> to vector<8x24xf32>
    %33 = arith.subf %29, %32 : vector<8x24xf32>
    %34 = math.exp %33 : vector<8x24xf32>
    %cst_18 = arith.constant dense<0.000000e+00> : vector<8xf32>
    %35 = vector.multi_reduction <add>, %34, %cst_18 [1] : vector<8x24xf32> to vector<8xf32>
    %36 = vector.shape_cast %35 : vector<8xf32> to vector<8x1xf32>
    %37 = tpu.reciprocal %36 {approx = true} : vector<8x1xf32> -> vector<8x1xf32>
    %38 = arith.truncf %34 : vector<8x24xf32> to vector<8x24xbf16>
    %39 = arith.truncf %25 : vector<24x16xf32> to vector<24x16xbf16>
    %cst_19 = arith.constant dense<0.000000e+00> : vector<8x16xf32>
    %40 = tpu.matmul %38, %39, %cst_19 {dimension_numbers = #tpu.dot_dimension_numbers<[1], [0], [0], [1], [0, 0, 1, 1], [], []>} : vector<8x24xbf16>, vector<24x16xbf16>, vector<8x16xf32> -> vector<8x16xf32>
    %41 = vector.broadcast %37 : vector<8x1xf32> to vector<8x16xf32>
    %42 = arith.mulf %40, %41 : vector<8x16xf32>
    %43 = vector.extract_strided_slice %5 {offsets = [0, 96], sizes = [16, 32], strides = [1, 1]} : vector<32x128xbf16> to vector<16x32xbf16>
    %44 = arith.truncf %42 : vector<8x16xf32> to vector<8x16xbf16>
    %cst_20 = arith.constant dense<0.000000e+00> : vector<8x32xf32>
    %45 = tpu.matmul %44, %43, %cst_20 {dimension_numbers = #tpu.dot_dimension_numbers<[1], [0], [0], [1], [0, 0, 1, 1], [], []>} : vector<8x16xbf16>, vector<16x32xbf16>, vector<8x32xf32> -> vector<8x32xf32>
    %46 = vector.extract_strided_slice %18 {offsets = [0, 16], sizes = [8, 16], strides = [1, 1]} : vector<8x128xf32> to vector<8x16xf32>
    %47 = vector.extract_strided_slice %22 {offsets = [0, 48], sizes = [24, 16], strides = [1, 1]} : vector<24x128xf32> to vector<24x16xf32>
    %48 = vector.extract_strided_slice %22 {offsets = [0, 80], sizes = [24, 16], strides = [1, 1]} : vector<24x128xf32> to vector<24x16xf32>
    %49 = arith.truncf %46 : vector<8x16xf32> to vector<8x16xbf16>
    %50 = arith.truncf %47 : vector<24x16xf32> to vector<24x16xbf16>
    %cst_21 = arith.constant dense<0.000000e+00> : vector<8x24xf32>
    %51 = tpu.matmul %49, %50, %cst_21 {dimension_numbers = #tpu.dot_dimension_numbers<[1], [1], [0], [0], [0, 0, 1, 0], [], []>} : vector<8x16xbf16>, vector<24x16xbf16>, vector<8x24xf32> -> vector<8x24xf32>
    %52 = arith.addf %51, %2 : vector<8x24xf32>
    %cst_22 = arith.constant dense<0xFF800000> : vector<8xf32>
    %53 = vector.multi_reduction <maximumf>, %52, %cst_22 [1] : vector<8x24xf32> to vector<8xf32>
    %54 = vector.shape_cast %53 : vector<8xf32> to vector<8x1xf32>
    %55 = vector.broadcast %54 : vector<8x1xf32> to vector<8x24xf32>
    %56 = arith.subf %52, %55 : vector<8x24xf32>
    %57 = math.exp %56 : vector<8x24xf32>
    %cst_23 = arith.constant dense<0.000000e+00> : vector<8xf32>
    %58 = vector.multi_reduction <add>, %57, %cst_23 [1] : vector<8x24xf32> to vector<8xf32>
    %59 = vector.shape_cast %58 : vector<8xf32> to vector<8x1xf32>
    %60 = tpu.reciprocal %59 {approx = true} : vector<8x1xf32> -> vector<8x1xf32>
    %61 = arith.truncf %57 : vector<8x24xf32> to vector<8x24xbf16>
    %62 = arith.truncf %48 : vector<24x16xf32> to vector<24x16xbf16>
    %cst_24 = arith.constant dense<0.000000e+00> : vector<8x16xf32>
    %63 = tpu.matmul %61, %62, %cst_24 {dimension_numbers = #tpu.dot_dimension_numbers<[1], [0], [0], [1], [0, 0, 1, 1], [], []>} : vector<8x24xbf16>, vector<24x16xbf16>, vector<8x16xf32> -> vector<8x16xf32>
    %64 = vector.broadcast %60 : vector<8x1xf32> to vector<8x16xf32>
    %65 = arith.mulf %63, %64 : vector<8x16xf32>
    %66 = vector.extract_strided_slice %5 {offsets = [16, 96], sizes = [16, 32], strides = [1, 1]} : vector<32x128xbf16> to vector<16x32xbf16>
    %67 = arith.truncf %65 : vector<8x16xf32> to vector<8x16xbf16>
    %cst_25 = arith.constant dense<0.000000e+00> : vector<8x32xf32>
    %68 = tpu.matmul %67, %66, %cst_25 {dimension_numbers = #tpu.dot_dimension_numbers<[1], [0], [0], [1], [0, 0, 1, 1], [], []>} : vector<8x16xbf16>, vector<16x32xbf16>, vector<8x32xf32> -> vector<8x32xf32>
    %69 = arith.addf %45, %68 : vector<8x32xf32>
    %70 = vector.extract_strided_slice %8 {offsets = [0, 96], sizes = [1, 32], strides = [1, 1]} : vector<1x128xf32> to vector<1x32xf32>
    %71 = vector.broadcast %70 : vector<1x32xf32> to vector<8x32xf32>
    %72 = arith.addf %69, %71 : vector<8x32xf32>
    %73 = arith.addf %1, %72 : vector<8x32xf32>
    %cst_26 = arith.constant dense<0.000000e+00> : vector<8xf32>
    %74 = vector.multi_reduction <add>, %73, %cst_26 [1] : vector<8x32xf32> to vector<8xf32>
    %75 = vector.shape_cast %74 : vector<8xf32> to vector<8x1xf32>
    %cst_27 = arith.constant 3.200000e+01 : f32
    %76 = vector.broadcast %cst_27 : f32 to vector<8x1xf32>
    %77 = arith.divf %75, %76 : vector<8x1xf32>
    %78 = vector.broadcast %77 : vector<8x1xf32> to vector<8x32xf32>
    %79 = arith.subf %73, %78 : vector<8x32xf32>
    %80 = arith.mulf %79, %79 : vector<8x32xf32>
    %cst_28 = arith.constant dense<0.000000e+00> : vector<8xf32>
    %81 = vector.multi_reduction <add>, %80, %cst_28 [1] : vector<8x32xf32> to vector<8xf32>
    %82 = vector.shape_cast %81 : vector<8xf32> to vector<8x1xf32>
    %cst_29 = arith.constant 3.200000e+01 : f32
    %83 = vector.broadcast %cst_29 : f32 to vector<8x1xf32>
    %84 = arith.divf %82, %83 : vector<8x1xf32>
    %85 = vector.broadcast %77 : vector<8x1xf32> to vector<8x32xf32>
    %86 = arith.subf %73, %85 : vector<8x32xf32>
    %cst_30 = arith.constant 9.99999974E-6 : f32
    %87 = vector.broadcast %cst_30 : f32 to vector<8x1xf32>
    %88 = arith.addf %84, %87 : vector<8x1xf32>
    %89 = math.rsqrt %88 : vector<8x1xf32>
    %90 = vector.broadcast %89 : vector<8x1xf32> to vector<8x32xf32>
    %91 = arith.mulf %86, %90 : vector<8x32xf32>
    %92 = vector.broadcast %11 : vector<1x32xf32> to vector<8x32xf32>
    %93 = arith.mulf %91, %92 : vector<8x32xf32>
    %94 = vector.broadcast %12 : vector<1x32xf32> to vector<8x32xf32>
    %95 = arith.addf %93, %94 : vector<8x32xf32>
    %96 = arith.truncf %95 : vector<8x32xf32> to vector<8x32xbf16>
    %cst_31 = arith.constant dense<0.000000e+00> : vector<8x64xf32>
    %97 = tpu.matmul %96, %6, %cst_31 {dimension_numbers = #tpu.dot_dimension_numbers<[1], [0], [0], [1], [0, 0, 1, 1], [], []>} : vector<8x32xbf16>, vector<32x64xbf16>, vector<8x64xf32> -> vector<8x64xf32>
    %98 = vector.broadcast %9 : vector<1x64xf32> to vector<8x64xf32>
    %99 = arith.addf %97, %98 : vector<8x64xf32>
    %cst_32 = arith.constant 0.000000e+00 : f32
    %100 = vector.broadcast %cst_32 : f32 to vector<8x64xf32>
    %101 = arith.maximumf %99, %100 : vector<8x64xf32>
    %102 = arith.truncf %101 : vector<8x64xf32> to vector<8x64xbf16>
    %cst_33 = arith.constant dense<0.000000e+00> : vector<8x32xf32>
    %103 = tpu.matmul %102, %7, %cst_33 {dimension_numbers = #tpu.dot_dimension_numbers<[1], [0], [0], [1], [0, 0, 1, 1], [], []>} : vector<8x64xbf16>, vector<64x32xbf16>, vector<8x32xf32> -> vector<8x32xf32>
    %104 = vector.broadcast %10 : vector<1x32xf32> to vector<8x32xf32>
    %105 = arith.addf %103, %104 : vector<8x32xf32>
    %106 = arith.addf %95, %105 : vector<8x32xf32>
    %cst_34 = arith.constant dense<0.000000e+00> : vector<8xf32>
    %107 = vector.multi_reduction <add>, %106, %cst_34 [1] : vector<8x32xf32> to vector<8xf32>
    %108 = vector.shape_cast %107 : vector<8xf32> to vector<8x1xf32>
    %cst_35 = arith.constant 3.200000e+01 : f32
    %109 = vector.broadcast %cst_35 : f32 to vector<8x1xf32>
    %110 = arith.divf %108, %109 : vector<8x1xf32>
    %111 = vector.broadcast %110 : vector<8x1xf32> to vector<8x32xf32>
    %112 = arith.subf %106, %111 : vector<8x32xf32>
    %113 = arith.mulf %112, %112 : vector<8x32xf32>
    %cst_36 = arith.constant dense<0.000000e+00> : vector<8xf32>
    %114 = vector.multi_reduction <add>, %113, %cst_36 [1] : vector<8x32xf32> to vector<8xf32>
    %115 = vector.shape_cast %114 : vector<8xf32> to vector<8x1xf32>
    %cst_37 = arith.constant 3.200000e+01 : f32
    %116 = vector.broadcast %cst_37 : f32 to vector<8x1xf32>
    %117 = arith.divf %115, %116 : vector<8x1xf32>
    %118 = vector.broadcast %110 : vector<8x1xf32> to vector<8x32xf32>
    %119 = arith.subf %106, %118 : vector<8x32xf32>
    %cst_38 = arith.constant 9.99999974E-6 : f32
    %120 = vector.broadcast %cst_38 : f32 to vector<8x1xf32>
    %121 = arith.addf %117, %120 : vector<8x1xf32>
    %122 = math.rsqrt %121 : vector<8x1xf32>
    %123 = vector.broadcast %122 : vector<8x1xf32> to vector<8x32xf32>
    %124 = arith.mulf %119, %123 : vector<8x32xf32>
    %125 = vector.broadcast %13 : vector<1x32xf32> to vector<8x32xf32>
    %126 = arith.mulf %124, %125 : vector<8x32xf32>
    %127 = vector.broadcast %14 : vector<1x32xf32> to vector<8x32xf32>
    %128 = arith.addf %126, %127 : vector<8x32xf32>
    %129 = tpu.concatenate %128, %0 in 0 : vector<8x32xf32>, vector<16x32xf32> -> vector<24x32xf32>
    %c128 = arith.constant 128 : index
    %c0_39 = arith.constant 0 : index
    %130 = vector.load %arg1[%c128, %c0_39] : memref<352x128xbf16, #tpu.memory_space<vmem>>, vector<32x128xbf16>
    %c160 = arith.constant 160 : index
    %c0_40 = arith.constant 0 : index
    %131 = vector.load %arg1[%c160, %c0_40] : memref<352x128xbf16, #tpu.memory_space<vmem>>, vector<32x64xbf16>
    %c192 = arith.constant 192 : index
    %c0_41 = arith.constant 0 : index
    %132 = vector.load %arg1[%c192, %c0_41] : memref<352x128xbf16, #tpu.memory_space<vmem>>, vector<64x32xbf16>
    %c40 = arith.constant 40 : index
    %c0_42 = arith.constant 0 : index
    %133 = vector.load %arg0[%c40, %c0_42] : memref<56x128xf32, #tpu.memory_space<vmem>>, vector<1x128xf32>
    %c41 = arith.constant 41 : index
    %c0_43 = arith.constant 0 : index
    %134 = vector.load %arg0[%c41, %c0_43] : memref<56x128xf32, #tpu.memory_space<vmem>>, vector<1x64xf32>
    %c42 = arith.constant 42 : index
    %c0_44 = arith.constant 0 : index
    %135 = vector.load %arg0[%c42, %c0_44] : memref<56x128xf32, #tpu.memory_space<vmem>>, vector<1x32xf32>
    %c43 = arith.constant 43 : index
    %c0_45 = arith.constant 0 : index
    %136 = vector.load %arg0[%c43, %c0_45] : memref<56x128xf32, #tpu.memory_space<vmem>>, vector<1x32xf32>
    %c44 = arith.constant 44 : index
    %c0_46 = arith.constant 0 : index
    %137 = vector.load %arg0[%c44, %c0_46] : memref<56x128xf32, #tpu.memory_space<vmem>>, vector<1x32xf32>
    %c45 = arith.constant 45 : index
    %c0_47 = arith.constant 0 : index
    %138 = vector.load %arg0[%c45, %c0_47] : memref<56x128xf32, #tpu.memory_space<vmem>>, vector<1x32xf32>
    %c46 = arith.constant 46 : index
    %c0_48 = arith.constant 0 : index
    %139 = vector.load %arg0[%c46, %c0_48] : memref<56x128xf32, #tpu.memory_space<vmem>>, vector<1x32xf32>
    %140 = arith.truncf %128 : vector<8x32xf32> to vector<8x32xbf16>
    %cst_49 = arith.constant dense<0.000000e+00> : vector<8x128xf32>
    %141 = tpu.matmul %140, %130, %cst_49 {dimension_numbers = #tpu.dot_dimension_numbers<[1], [0], [0], [1], [0, 0, 1, 1], [], []>} : vector<8x32xbf16>, vector<32x128xbf16>, vector<8x128xf32> -> vector<8x128xf32>
    %142 = vector.broadcast %133 : vector<1x128xf32> to vector<8x128xf32>
    %143 = arith.addf %141, %142 : vector<8x128xf32>
    %144 = arith.truncf %129 : vector<24x32xf32> to vector<24x32xbf16>
    %cst_50 = arith.constant dense<0.000000e+00> : vector<24x128xf32>
    %145 = tpu.matmul %144, %130, %cst_50 {dimension_numbers = #tpu.dot_dimension_numbers<[1], [0], [0], [1], [0, 0, 1, 1], [], []>} : vector<24x32xbf16>, vector<32x128xbf16>, vector<24x128xf32> -> vector<24x128xf32>
    %146 = vector.broadcast %133 : vector<1x128xf32> to vector<24x128xf32>
    %147 = arith.addf %145, %146 : vector<24x128xf32>
    %148 = vector.extract_strided_slice %143 {offsets = [0, 0], sizes = [8, 16], strides = [1, 1]} : vector<8x128xf32> to vector<8x16xf32>
    %149 = vector.extract_strided_slice %147 {offsets = [0, 32], sizes = [24, 16], strides = [1, 1]} : vector<24x128xf32> to vector<24x16xf32>
    %150 = vector.extract_strided_slice %147 {offsets = [0, 64], sizes = [24, 16], strides = [1, 1]} : vector<24x128xf32> to vector<24x16xf32>
    %151 = arith.truncf %148 : vector<8x16xf32> to vector<8x16xbf16>
    %152 = arith.truncf %149 : vector<24x16xf32> to vector<24x16xbf16>
    %cst_51 = arith.constant dense<0.000000e+00> : vector<8x24xf32>
    %153 = tpu.matmul %151, %152, %cst_51 {dimension_numbers = #tpu.dot_dimension_numbers<[1], [1], [0], [0], [0, 0, 1, 0], [], []>} : vector<8x16xbf16>, vector<24x16xbf16>, vector<8x24xf32> -> vector<8x24xf32>
    %154 = arith.addf %153, %2 : vector<8x24xf32>
    %cst_52 = arith.constant dense<0xFF800000> : vector<8xf32>
    %155 = vector.multi_reduction <maximumf>, %154, %cst_52 [1] : vector<8x24xf32> to vector<8xf32>
    %156 = vector.shape_cast %155 : vector<8xf32> to vector<8x1xf32>
    %157 = vector.broadcast %156 : vector<8x1xf32> to vector<8x24xf32>
    %158 = arith.subf %154, %157 : vector<8x24xf32>
    %159 = math.exp %158 : vector<8x24xf32>
    %cst_53 = arith.constant dense<0.000000e+00> : vector<8xf32>
    %160 = vector.multi_reduction <add>, %159, %cst_53 [1] : vector<8x24xf32> to vector<8xf32>
    %161 = vector.shape_cast %160 : vector<8xf32> to vector<8x1xf32>
    %162 = tpu.reciprocal %161 {approx = true} : vector<8x1xf32> -> vector<8x1xf32>
    %163 = arith.truncf %159 : vector<8x24xf32> to vector<8x24xbf16>
    %164 = arith.truncf %150 : vector<24x16xf32> to vector<24x16xbf16>
    %cst_54 = arith.constant dense<0.000000e+00> : vector<8x16xf32>
    %165 = tpu.matmul %163, %164, %cst_54 {dimension_numbers = #tpu.dot_dimension_numbers<[1], [0], [0], [1], [0, 0, 1, 1], [], []>} : vector<8x24xbf16>, vector<24x16xbf16>, vector<8x16xf32> -> vector<8x16xf32>
    %166 = vector.broadcast %162 : vector<8x1xf32> to vector<8x16xf32>
    %167 = arith.mulf %165, %166 : vector<8x16xf32>
    %168 = vector.extract_strided_slice %130 {offsets = [0, 96], sizes = [16, 32], strides = [1, 1]} : vector<32x128xbf16> to vector<16x32xbf16>
    %169 = arith.truncf %167 : vector<8x16xf32> to vector<8x16xbf16>
    %cst_55 = arith.constant dense<0.000000e+00> : vector<8x32xf32>
    %170 = tpu.matmul %169, %168, %cst_55 {dimension_numbers = #tpu.dot_dimension_numbers<[1], [0], [0], [1], [0, 0, 1, 1], [], []>} : vector<8x16xbf16>, vector<16x32xbf16>, vector<8x32xf32> -> vector<8x32xf32>
    %171 = vector.extract_strided_slice %143 {offsets = [0, 16], sizes = [8, 16], strides = [1, 1]} : vector<8x128xf32> to vector<8x16xf32>
    %172 = vector.extract_strided_slice %147 {offsets = [0, 48], sizes = [24, 16], strides = [1, 1]} : vector<24x128xf32> to vector<24x16xf32>
    %173 = vector.extract_strided_slice %147 {offsets = [0, 80], sizes = [24, 16], strides = [1, 1]} : vector<24x128xf32> to vector<24x16xf32>
    %174 = arith.truncf %171 : vector<8x16xf32> to vector<8x16xbf16>
    %175 = arith.truncf %172 : vector<24x16xf32> to vector<24x16xbf16>
    %cst_56 = arith.constant dense<0.000000e+00> : vector<8x24xf32>
    %176 = tpu.matmul %174, %175, %cst_56 {dimension_numbers = #tpu.dot_dimension_numbers<[1], [1], [0], [0], [0, 0, 1, 0], [], []>} : vector<8x16xbf16>, vector<24x16xbf16>, vector<8x24xf32> -> vector<8x24xf32>
    %177 = arith.addf %176, %2 : vector<8x24xf32>
    %cst_57 = arith.constant dense<0xFF800000> : vector<8xf32>
    %178 = vector.multi_reduction <maximumf>, %177, %cst_57 [1] : vector<8x24xf32> to vector<8xf32>
    %179 = vector.shape_cast %178 : vector<8xf32> to vector<8x1xf32>
    %180 = vector.broadcast %179 : vector<8x1xf32> to vector<8x24xf32>
    %181 = arith.subf %177, %180 : vector<8x24xf32>
    %182 = math.exp %181 : vector<8x24xf32>
    %cst_58 = arith.constant dense<0.000000e+00> : vector<8xf32>
    %183 = vector.multi_reduction <add>, %182, %cst_58 [1] : vector<8x24xf32> to vector<8xf32>
    %184 = vector.shape_cast %183 : vector<8xf32> to vector<8x1xf32>
    %185 = tpu.reciprocal %184 {approx = true} : vector<8x1xf32> -> vector<8x1xf32>
    %186 = arith.truncf %182 : vector<8x24xf32> to vector<8x24xbf16>
    %187 = arith.truncf %173 : vector<24x16xf32> to vector<24x16xbf16>
    %cst_59 = arith.constant dense<0.000000e+00> : vector<8x16xf32>
    %188 = tpu.matmul %186, %187, %cst_59 {dimension_numbers = #tpu.dot_dimension_numbers<[1], [0], [0], [1], [0, 0, 1, 1], [], []>} : vector<8x24xbf16>, vector<24x16xbf16>, vector<8x16xf32> -> vector<8x16xf32>
    %189 = vector.broadcast %185 : vector<8x1xf32> to vector<8x16xf32>
    %190 = arith.mulf %188, %189 : vector<8x16xf32>
    %191 = vector.extract_strided_slice %130 {offsets = [16, 96], sizes = [16, 32], strides = [1, 1]} : vector<32x128xbf16> to vector<16x32xbf16>
    %192 = arith.truncf %190 : vector<8x16xf32> to vector<8x16xbf16>
    %cst_60 = arith.constant dense<0.000000e+00> : vector<8x32xf32>
    %193 = tpu.matmul %192, %191, %cst_60 {dimension_numbers = #tpu.dot_dimension_numbers<[1], [0], [0], [1], [0, 0, 1, 1], [], []>} : vector<8x16xbf16>, vector<16x32xbf16>, vector<8x32xf32> -> vector<8x32xf32>
    %194 = arith.addf %170, %193 : vector<8x32xf32>
    %195 = vector.extract_strided_slice %133 {offsets = [0, 96], sizes = [1, 32], strides = [1, 1]} : vector<1x128xf32> to vector<1x32xf32>
    %196 = vector.broadcast %195 : vector<1x32xf32> to vector<8x32xf32>
    %197 = arith.addf %194, %196 : vector<8x32xf32>
    %198 = arith.addf %128, %197 : vector<8x32xf32>
    %cst_61 = arith.constant dense<0.000000e+00> : vector<8xf32>
    %199 = vector.multi_reduction <add>, %198, %cst_61 [1] : vector<8x32xf32> to vector<8xf32>
    %200 = vector.shape_cast %199 : vector<8xf32> to vector<8x1xf32>
    %cst_62 = arith.constant 3.200000e+01 : f32
    %201 = vector.broadcast %cst_62 : f32 to vector<8x1xf32>
    %202 = arith.divf %200, %201 : vector<8x1xf32>
    %203 = vector.broadcast %202 : vector<8x1xf32> to vector<8x32xf32>
    %204 = arith.subf %198, %203 : vector<8x32xf32>
    %205 = arith.mulf %204, %204 : vector<8x32xf32>
    %cst_63 = arith.constant dense<0.000000e+00> : vector<8xf32>
    %206 = vector.multi_reduction <add>, %205, %cst_63 [1] : vector<8x32xf32> to vector<8xf32>
    %207 = vector.shape_cast %206 : vector<8xf32> to vector<8x1xf32>
    %cst_64 = arith.constant 3.200000e+01 : f32
    %208 = vector.broadcast %cst_64 : f32 to vector<8x1xf32>
    %209 = arith.divf %207, %208 : vector<8x1xf32>
    %210 = vector.broadcast %202 : vector<8x1xf32> to vector<8x32xf32>
    %211 = arith.subf %198, %210 : vector<8x32xf32>
    %cst_65 = arith.constant 9.99999974E-6 : f32
    %212 = vector.broadcast %cst_65 : f32 to vector<8x1xf32>
    %213 = arith.addf %209, %212 : vector<8x1xf32>
    %214 = math.rsqrt %213 : vector<8x1xf32>
    %215 = vector.broadcast %214 : vector<8x1xf32> to vector<8x32xf32>
    %216 = arith.mulf %211, %215 : vector<8x32xf32>
    %217 = vector.broadcast %136 : vector<1x32xf32> to vector<8x32xf32>
    %218 = arith.mulf %216, %217 : vector<8x32xf32>
    %219 = vector.broadcast %137 : vector<1x32xf32> to vector<8x32xf32>
    %220 = arith.addf %218, %219 : vector<8x32xf32>
    %221 = arith.truncf %220 : vector<8x32xf32> to vector<8x32xbf16>
    %cst_66 = arith.constant dense<0.000000e+00> : vector<8x64xf32>
    %222 = tpu.matmul %221, %131, %cst_66 {dimension_numbers = #tpu.dot_dimension_numbers<[1], [0], [0], [1], [0, 0, 1, 1], [], []>} : vector<8x32xbf16>, vector<32x64xbf16>, vector<8x64xf32> -> vector<8x64xf32>
    %223 = vector.broadcast %134 : vector<1x64xf32> to vector<8x64xf32>
    %224 = arith.addf %222, %223 : vector<8x64xf32>
    %cst_67 = arith.constant 0.000000e+00 : f32
    %225 = vector.broadcast %cst_67 : f32 to vector<8x64xf32>
    %226 = arith.maximumf %224, %225 : vector<8x64xf32>
    %227 = arith.truncf %226 : vector<8x64xf32> to vector<8x64xbf16>
    %cst_68 = arith.constant dense<0.000000e+00> : vector<8x32xf32>
    %228 = tpu.matmul %227, %132, %cst_68 {dimension_numbers = #tpu.dot_dimension_numbers<[1], [0], [0], [1], [0, 0, 1, 1], [], []>} : vector<8x64xbf16>, vector<64x32xbf16>, vector<8x32xf32> -> vector<8x32xf32>
    %229 = vector.broadcast %135 : vector<1x32xf32> to vector<8x32xf32>
    %230 = arith.addf %228, %229 : vector<8x32xf32>
    %231 = arith.addf %220, %230 : vector<8x32xf32>
    %cst_69 = arith.constant dense<0.000000e+00> : vector<8xf32>
    %232 = vector.multi_reduction <add>, %231, %cst_69 [1] : vector<8x32xf32> to vector<8xf32>
    %233 = vector.shape_cast %232 : vector<8xf32> to vector<8x1xf32>
    %cst_70 = arith.constant 3.200000e+01 : f32
    %234 = vector.broadcast %cst_70 : f32 to vector<8x1xf32>
    %235 = arith.divf %233, %234 : vector<8x1xf32>
    %236 = vector.broadcast %235 : vector<8x1xf32> to vector<8x32xf32>
    %237 = arith.subf %231, %236 : vector<8x32xf32>
    %238 = arith.mulf %237, %237 : vector<8x32xf32>
    %cst_71 = arith.constant dense<0.000000e+00> : vector<8xf32>
    %239 = vector.multi_reduction <add>, %238, %cst_71 [1] : vector<8x32xf32> to vector<8xf32>
    %240 = vector.shape_cast %239 : vector<8xf32> to vector<8x1xf32>
    %cst_72 = arith.constant 3.200000e+01 : f32
    %241 = vector.broadcast %cst_72 : f32 to vector<8x1xf32>
    %242 = arith.divf %240, %241 : vector<8x1xf32>
    %243 = vector.broadcast %235 : vector<8x1xf32> to vector<8x32xf32>
    %244 = arith.subf %231, %243 : vector<8x32xf32>
    %cst_73 = arith.constant 9.99999974E-6 : f32
    %245 = vector.broadcast %cst_73 : f32 to vector<8x1xf32>
    %246 = arith.addf %242, %245 : vector<8x1xf32>
    %247 = math.rsqrt %246 : vector<8x1xf32>
    %248 = vector.broadcast %247 : vector<8x1xf32> to vector<8x32xf32>
    %249 = arith.mulf %244, %248 : vector<8x32xf32>
    %250 = vector.broadcast %138 : vector<1x32xf32> to vector<8x32xf32>
    %251 = arith.mulf %249, %250 : vector<8x32xf32>
    %252 = vector.broadcast %139 : vector<1x32xf32> to vector<8x32xf32>
    %253 = arith.addf %251, %252 : vector<8x32xf32>
    %c256 = arith.constant 256 : index
    %c0_74 = arith.constant 0 : index
    %254 = vector.load %arg1[%c256, %c0_74] : memref<352x128xbf16, #tpu.memory_space<vmem>>, vector<32x64xbf16>
    %c288 = arith.constant 288 : index
    %c0_75 = arith.constant 0 : index
    %255 = vector.load %arg1[%c288, %c0_75] : memref<352x128xbf16, #tpu.memory_space<vmem>>, vector<64x128xbf16>
    %c48 = arith.constant 48 : index
    %c0_76 = arith.constant 0 : index
    %256 = vector.load %arg0[%c48, %c0_76] : memref<56x128xf32, #tpu.memory_space<vmem>>, vector<1x64xf32>
    %c49 = arith.constant 49 : index
    %c0_77 = arith.constant 0 : index
    %257 = vector.load %arg0[%c49, %c0_77] : memref<56x128xf32, #tpu.memory_space<vmem>>, vector<1x128xf32>
    %258 = arith.truncf %253 : vector<8x32xf32> to vector<8x32xbf16>
    %cst_78 = arith.constant dense<0.000000e+00> : vector<8x64xf32>
    %259 = tpu.matmul %258, %254, %cst_78 {dimension_numbers = #tpu.dot_dimension_numbers<[1], [0], [0], [1], [0, 0, 1, 1], [], []>} : vector<8x32xbf16>, vector<32x64xbf16>, vector<8x64xf32> -> vector<8x64xf32>
    %260 = vector.broadcast %256 : vector<1x64xf32> to vector<8x64xf32>
    %261 = arith.addf %259, %260 : vector<8x64xf32>
    %cst_79 = arith.constant 0.000000e+00 : f32
    %262 = vector.broadcast %cst_79 : f32 to vector<8x64xf32>
    %263 = arith.maximumf %261, %262 : vector<8x64xf32>
    %264 = arith.truncf %263 : vector<8x64xf32> to vector<8x64xbf16>
    %cst_80 = arith.constant dense<0.000000e+00> : vector<8x128xf32>
    %265 = tpu.matmul %264, %255, %cst_80 {dimension_numbers = #tpu.dot_dimension_numbers<[1], [0], [0], [1], [0, 0, 1, 1], [], []>} : vector<8x64xbf16>, vector<64x128xbf16>, vector<8x128xf32> -> vector<8x128xf32>
    %266 = vector.broadcast %257 : vector<1x128xf32> to vector<8x128xf32>
    %267 = arith.addf %265, %266 : vector<8x128xf32>
    %c0_81 = arith.constant 0 : index
    %c0_82 = arith.constant 0 : index
    %268 = vector.load %arg2[%c0_81, %c0_82] : memref<24x128xf32, #tpu.memory_space<vmem>>, vector<8x128xf32>
    tpu.vector_store %arg2[%c0_81, %c0_82], %267 {strides = array<i32>} : memref<24x128xf32, #tpu.memory_space<vmem>>, vector<8x128xf32>,
    %269 = vector.extract_strided_slice %267 {offsets = [0, 0], sizes = [8, 32], strides = [1, 1]} : vector<8x128xf32> to vector<8x32xf32>
    %cst_83 = arith.constant 0.000000e+00 : f32
    %270 = vector.broadcast %cst_83 : f32 to vector<120x32xf32>
    %271 = tpu.concatenate %269, %270 in 0 : vector<8x32xf32>, vector<120x32xf32> -> vector<128x32xf32>
    %272 = arith.truncf %271 : vector<128x32xf32> to vector<128x32xbf16>
    %cst_84 = arith.constant dense<0.000000e+00> : vector<16x128xf32>
    %273 = tpu.matmul %3, %272, %cst_84 {dimension_numbers = #tpu.dot_dimension_numbers<[1], [1], [0], [0], [0, 0, 1, 0], [], []>} : vector<16x32xbf16>, vector<128x32xbf16>, vector<16x128xf32> -> vector<16x128xf32>
    %c8 = arith.constant 8 : index
    %c0_85 = arith.constant 0 : index
    %274 = vector.load %arg2[%c8, %c0_85] : memref<24x128xf32, #tpu.memory_space<vmem>>, vector<16x128xf32>
    tpu.vector_store %arg2[%c8, %c0_85], %273 {strides = array<i32>} : memref<24x128xf32, #tpu.memory_space<vmem>>, vector<16x128xf32>,
    return
  }
}

</mosaic_0001>

<bundles_post_ra>
// kernel: graph_forward.1
= control target key start
LH: loop header
LB: loop body
LE: loop exit
PB: predicated region body
PF: predicated region fallthrough
CT: control target
= control target key end

     0   :  { %vm54_vm0 = vcmask 261120   ;;  %s1094_s21 = smov 80   ;;  %s1095_s22 = smov 96   ;;  %vm106_vm1 = vcmask 130048   ;;  %vm149_vm2 = vcmask 1043456   ;;  %vm129_vm3 = vcmask 195584   ;;  %s1405_s1 = inlined_call_operand.vmem [shape: bf16[352,128], index: 1, kind: input, shape index: {}]   ;;  %s1406_s0 = inlined_call_operand.vmem [shape: f32[56,128], index: 0, kind: input, shape index: {}]   ;;  %s1407_s2 = inlined_call_operand.vmem [shape: f32[24,128], index: 2, kind: output, shape index: {}]  }
   0x1   :  { %v1119_v0 = vld [vmem:[%s1405_s1 + $0x8] sm:$0xff]  ;;  %v1124_v1 = vld [vmem:[%s1405_s1] sm:$0xff]  ;;  %v1135_v3 = vld [vmem:[%s1406_s0 + $0x10] sm:$0xff]  ;;  %s1096_s23 = smov 112   ;;  %s1097_s24 = smov 64   ;;  %vm368_vm8 = vcmask 523264  }
   0x2   :  { %v1129_v2 = vld [vmem:[%s1406_s0] sm:$0xff]  ;;  %85 = vmatpush.bf16.msra.mxu1 %v1119_v0  ;;  %64 = vmatpush.bf16.msra.mxu0 %v1119_v0  ;;  %v40_v5 = vpack.c.bf16 %v1135_v3, %v1135_v3  ;;  %v1149_v6 = vld [vmem:[%s1406_s0 + $0x8] sm:$0xff]  ;;  %s1098_s25 = smov 48   ;;  %v1186_v37 = vld [vmem:[%s1406_s0 + $0x18] sm:$0xff]  ;;  %s1099_s28 = smov 32  }
   0x3   :  { %v71_v4 = vpack.c.bf16 %v1129_v2, %v1135_v3  ;;  %v1153_v7 = vpack.c.bf16 %v1149_v6, %v1149_v6  ;;  %v1160_v10 = vld [vmem:[%s1406_s0 + $0x20] ss:$0 sm:$0xff] }
   0x6   :  { %86 = vmatpush.bf16.msra.mxu1 %v1124_v1  ;;  %65 = vmatpush.bf16.msra.mxu0 %v1124_v1 }
   0x9   :  { %919 = vmatmul.msk.bf16.vlgmr.msra.gmra.mxu1 %vm54_vm0, %v71_v4  ;;  %918 = vmatmul.msk.bf16.vlgmr.msra.gmra.mxu0 %vm54_vm0, %v40_v5 }
  0x19   :  { %920 = vmatmul.msk.bf16.gmra.mxu1 %vm54_vm0, %v1153_v7 }
  0x86   :  { %v88_v8 = vpop.f32.mrf.mxu1  ;;  %v67_v14 = vpop.f32.mrf.mxu0 }
  0x87   :  { %v68_v15 = vadd.f32 %v1160_v10, %v67_v14  ;;  %v89_v19 = vadd.f32 %v1160_v10, %v88_v8 }
  0x89   :  { %v97_v18 = vpack.c.bf16 %v68_v15, %v68_v15 }
  0x8b   :  { %169 = vrot.lane.b32.xlu2 %v97_v18, %s1096_s23 }
  0x8e   :  { %v90_v9 = vpop.f32.mrf.mxu1  ;;  %v69_v21 = vpop.f32.mrf.mxu0 }
  0x8f   :  { %v91_v16 = vadd.f32 %v1160_v10, %v90_v9  ;;  %v1100_v21 = vmov 32.0  }
  0x91   :  { %v98_v20 = vpack.c.bf16 %v91_v16, %v89_v19 }
  0x96   :  { %v93_v11 = vpop.f32.mrf.mxu1 }
  0x97   :  { %v94_v12 = vadd.f32 %v1160_v10, %v93_v11 }
  0x99   :  { %v99_v13 = vpack.c.bf16 %v94_v12, %v94_v12 }
  0x9b   :  { %173 = vrot.lane.b32.xlu1 %v99_v13, %s1094_s21  ;;  %104 = vrot.lane.b32.xlu0 %v99_v13, %s1095_s22 }
  0x9e   :  { %v95_v17 = vpop.f32.mrf.mxu1 }
  0xa3   :  { %171 = vrot.lane.b32.xlu1 %v98_v20, %s1094_s21  ;;  %102 = vrot.lane.b32.xlu0 %v98_v20, %s1095_s22 }
  0xab   :  { %141 = vrot.lane.b32.xlu1 %v98_v20, %s1097_s24  ;;  %143 = vrot.lane.b32.xlu0 %v99_v13, %s1097_s24 }
  0xb3   :  { %210 = vrot.lane.b32.xlu1 %v99_v13, %s1098_s25 }
  0xbb   :  { %208 = vrot.lane.b32.xlu1 %v98_v20, %s1098_s25 }
  0xe5   :  { %v170_v30 = vpop.permute.xlu2 %169 }
 0x10d   :  { %v174_v22 = vpop.permute.xlu1 %173  ;;  %v105_v23 = vpop.permute.xlu0 %104 }
 0x10e   :  { %v114_v24 = vsel %vm106_vm1, %v105_v23, 0  ;;  %v182_v25 = vsel %vm106_vm1, %v174_v22, 0 }
 0x10f   :  { %122 = vmatpush.bf16.xpose.msra.mxu2 %v114_v24  ;;  %190 = vmatpush.bf16.xpose.msrb.mxu0 %v182_v25 }
 0x115   :  { %v172_v26 = vpop.permute.xlu1 %171  ;;  %v103_v27 = vpop.permute.xlu0 %102 }
 0x116   :  { %v111_v28 = vsel %vm106_vm1, %v103_v27, 0  ;;  %v179_v29 = vsel %vm106_vm1, %v172_v26, 0 }
 0x117   :  { %123 = vmatpush.bf16.xpose.msra.mxu2 %v111_v28  ;;  %191 = vmatpush.bf16.xpose.msrb.mxu0 %v179_v29 }
 0x11d   :  { %v142_v31 = vpop.permute.xlu1 %141  ;;  %v144_v32 = vpop.permute.xlu0 %143 }
 0x11e   :  { %921 = vmatmul.msk.bf16.vlgmr.msra.gmra.mxu2 %vm106_vm1, %v97_v18  ;;  %923 = vmatmul.msk.bf16.vlgmr.msrb.gmra.mxu0 %vm106_vm1, %v170_v30  ;;  %v151_v33 = vsel %vm149_vm2, %v144_v32, 0  ;;  %v1026_v32 = vld [vmem:[%s1405_s1 + $0x18] sm:$0xff] }
 0x11f   :  { %159 = vmatpush.bf16.msra.mxu3 %v151_v33  ;;  %334 = vmatpush.bf16.msrb.mxu1 %v1026_v32  ;;  %v1025_v33 = vld [vmem:[%s1405_s1 + $0x10] sm:$0xff]  ;;  %v1280_v32 = vld [vmem:[%s1406_s0 + $0x28] ss:$0 sm:$0xff] }
 0x123   :  { %160 = vmatpush.bf16.msra.mxu3 %v142_v31  ;;  %335 = vmatpush.bf16.msrb.mxu1 %v1025_v33 }
 0x125   :  { %v211_v34 = vpop.permute.xlu1 %210 }
 0x126   :  { %v217_v35 = vsel %vm149_vm2, %v211_v34, 0  ;;  %v1030_v34 = vld [vmem:[%s1405_s1 + $0x38] sm:$0xff] }
 0x127   :  { %225 = vmatpush.bf16.msrb.mxu3 %v217_v35 }
 0x12d   :  { %v209_v36 = vpop.permute.xlu1 %208 }
 0x12e   :  { %226 = vmatpush.bf16.msrb.mxu3 %v209_v36 }
 0x19b   :  { %v193_v38 = vpop.f32.mrf.mxu0 }
 0x19c   :  { %v194_v39 = vadd.f32 %v193_v38, %v1186_v37  ;;  %v1029_v38 = vld [vmem:[%s1405_s1 + $0x30] sm:$0xff] }
 0x19e   :  { %v197_v40 = vsel %vm129_vm3, %v194_v39, -inf }
 0x19f   :  { %198 = vmax.xlane.f32.xlu0 %v197_v40 }
 0x1a1   :  { %v125_v41 = vpop.f32.mrf.mxu2 }
 0x1a2   :  { %v126_v42 = vadd.f32 %v125_v41, %v1186_v37 }
 0x1a3   :  { %v195_v43 = vpop.f32.mrf.mxu0 }
 0x1a4   :  { %v130_v44 = vsel %vm129_vm3, %v126_v42, -inf }
 0x1a5   :  { %131 = vmax.xlane.f32.xlu2 %v130_v44 }
 0x1a9   :  { %v127_v45 = vpop.f32.mrf.mxu2 }
 0x1b3   :  { %253 = vrot.lane.b32.xlu0 %v1124_v1, %s1099_s28 }
 0x212   :  { %v199_v46 = vpop.xlane.xlu0 %198 }
 0x213   :  { %v200_v47 = vsub.f32 %v194_v39, %v199_v46  ;;  %v1053_v46 = vld [vmem:[%s1406_s0 + $0x23] ss:$0 sm:$0xff] }
 0x215   :  { %v201_v48 = vmul.f32 1.442695, %v200_v47 }
 0x217   :  { %1068 = vpow2.f32 %v201_v48 }
 0x218   :  { %v132_v49 = vpop.xlane.xlu2 %131 }
 0x219   :  { %v133_v50 = vsub.f32 %v126_v42, %v132_v49  ;;  %v1054_v49 = vld [vmem:[%s1406_s0 + $0x24] ss:$0 sm:$0xff] }
 0x21b   :  { %v134_v51 = vmul.f32 1.442695, %v133_v50 }
 0x21d   :  { %v1069_v52 = vpop.eup %1068  ;;  %1070 = vpow2.f32 %v134_v51 }
 0x21e   :  { %v203_v53 = vsel %vm129_vm3, %v1069_v52, 0.0  ;;  %v207_v57 = vpack.c.bf16 %v1069_v52, %v1069_v52 }
 0x21f   :  { %204 = vadd.xlane.f32.xlu1 %v203_v53  ;;  %v1028_v53 = vld [vmem:[%s1405_s1 + $0x28] sm:$0xff] }
 0x223   :  { %v1071_v54 = vpop.eup %1070 }
 0x224   :  { %v136_v55 = vsel %vm129_vm3, %v1071_v54, 0.0  ;;  %v140_v56 = vpack.c.bf16 %v1071_v54, %v1071_v54  ;;  %v1027_v54 = vld [vmem:[%s1405_s1 + $0x20] sm:$0xff] }
 0x225   :  { %137 = vadd.xlane.f32.xlu2 %v136_v55  ;;  %v254_v58 = vpop.permute.xlu0 %253  ;;  %v1055_v55 = vld [vmem:[%s1406_s0 + $0x21] ss:$0 sm:$0xff] }
 0x226   :  { %922 = vmatmul.msk.bf16.vlgmr.msra.gmra.mxu3 %vm129_vm3, %v140_v56  ;;  %266 = vmatpush.bf16.msra.mxu0 %v254_v58 }
 0x227   :  { %376 = vmatpush.bf16.msra.mxu3 %v1030_v34 }
 0x22b   :  { %377 = vmatpush.bf16.msra.mxu3 %v1029_v38 }
 0x22f   :  { %378 = vmatpush.bf16.msra.mxu3 %v1028_v53 }
 0x233   :  { %379 = vmatpush.bf16.msra.mxu3 %v1027_v54 }
 0x236   :  { %924 = vmatmul.msk.bf16.vlgmr.msrb.gmra.mxu3 %vm129_vm3, %v207_v57 }
 0x23d   :  { %234 = vrot.lane.b32.xlu2 %v1119_v0, %s1099_s28 }
 0x245   :  { %273 = vrot.lane.b32.xlu2 %v1160_v10, %s1099_s28 }
 0x292   :  { %v205_v4 = vpop.xlane.xlu1 %204 }
 0x298   :  { %v138_v59 = vpop.xlane.xlu2 %137 }
 0x299   :  { %1072 = vrcp.f32 %v138_v59 }
 0x29a   :  { %1074 = vrcp.f32 %v205_v4 }
 0x29b   :  { %1076 = vrcp.f32 %v1100_v21 }
 0x29f   :  { %v1073_v61 = vpop.eup %1072 }
 0x2a0   :  { %v235_v60 = vpop.permute.xlu2 %234  ;;  %v1075_v8 = vpop.eup %1074 }
 0x2a1   :  { %247 = vmatpush.bf16.msrb.mxu2 %v235_v60  ;;  %v1077_v22 = vpop.eup %1076 }
 0x2a2   :  { %v282_v23 = vmul.f32 32.0, %v1077_v22  ;;  %vm286_vm4 = vweird.f32 %v1077_v22 }
 0x2a4   :  { %v283_v24 = vsub.f32 1.0, %v282_v23  ;;  %v1057_v23 = vld [vmem:[%s1406_s0 + $0x25] ss:$0 sm:$0xff] }
 0x2a6   :  { %v284_v25 = vmul.f32 %v1077_v22, %v283_v24 }
 0x2a8   :  { %v274_v15 = vpop.permute.xlu2 %273  ;;  %v285_v26 = vadd.f32 %v1077_v22, %v284_v25  ;;  %v1058_v25 = vld [vmem:[%s1406_s0 + $0x26] ss:$0 sm:$0xff] }
 0x2a9   :  { %v162_v62 = vpop.f32.mrf.mxu3 }
 0x2aa   :  { %v166_v63 = vmul.f32 %v1073_v61, %v162_v62  ;;  %v1206_v27 = vsel %vm286_vm4, %v1077_v22, %v285_v26  ;;  %v1056_v61 = vld [vmem:[%s1406_s0 + $0x22] ss:$0 sm:$0xff] }
 0x2ac   :  { %v167_v1 = vpack.c.bf16 %v166_v63, %v166_v63 }
 0x2ae   :  { %926 = vmatmul.msk.bf16.vlgmr.msra.gmra.mxu0 %vm106_vm1, %v167_v1 }
 0x2b1   :  { %v164_v5 = vpop.f32.mrf.mxu3 }
 0x2b9   :  { %v228_v0 = vpop.f32.mrf.mxu3 }
 0x2ba   :  { %v232_v9 = vmul.f32 %v1075_v8, %v228_v0 }
 0x2bc   :  { %v233_v11 = vpack.c.bf16 %v232_v9, %v232_v9 }
 0x2be   :  { %925 = vmatmul.msk.bf16.vlgmr.msrb.gmra.mxu2 %vm106_vm1, %v233_v11 }
 0x2c1   :  { %v230_v10 = vpop.f32.mrf.mxu3 }
 0x32b   :  { %v268_v12 = vpop.f32.mrf.mxu0 }
 0x333   :  { %v270_v13 = vpop.f32.mrf.mxu0 }
 0x334   :  { %v1256_v13 = vld [vmem:[%s1405_s1 + $0x40] sm:$0xff] }
 0x341   :  { %v249_v14 = vpop.f32.mrf.mxu2 }
 0x342   :  { %v269_v16 = vadd.f32 %v268_v12, %v249_v14  ;;  %v1249_v12 = vld [vmem:[%s1405_s1 + $0x48] sm:$0xff] }
 0x343   :  { %458 = vmatpush.bf16.msra.mxu2 %v1249_v12  ;;  %475 = vmatpush.bf16.msrb.mxu0 %v1249_v12 }
 0x344   :  { %v276_v17 = vadd.f32 %v274_v15, %v269_v16 }
 0x346   :  { %v277_v18 = vadd.f32 %v276_v17, %v1135_v3 }
 0x347   :  { %459 = vmatpush.bf16.msra.mxu2 %v1256_v13  ;;  %476 = vmatpush.bf16.msrb.mxu0 %v1256_v13 }
 0x348   :  { %v278_v19 = vsel %vm54_vm0, %v277_v18, 0.0 }
 0x349   :  { %v251_v20 = vpop.f32.mrf.mxu2  ;;  %279 = vadd.xlane.f32.xlu1 %v278_v19 }
 0x3bc   :  { %v280_v28 = vpop.xlane.xlu1 %279 }
 0x3bd   :  { %v288_v29 = vmul.f32 %v1206_v27, %v280_v28 }
 0x3bf   :  { %v289_v30 = vsub.f32 %v277_v18, %v288_v29 }
 0x3c1   :  { %v290_v31 = vmul.f32 %v289_v30, %v289_v30 }
 0x3c3   :  { %v291_v3 = vsel %vm54_vm0, %v290_v31, 0.0 }
 0x3c4   :  { %292 = vadd.xlane.f32.xlu0 %v291_v3 }
 0x437   :  { %v293_v35 = vpop.xlane.xlu0 %292 }
 0x438   :  { %v294_v36 = vmul.f32 %v293_v35, %v1206_v27 }
 0x43a   :  { %v295_v39 = vadd.f32 1e-05, %v294_v36 }
 0x43c   :  { %1078 = vrsqrt.f32 %v295_v39  ;;  %vm302_vm6 = vweird.f32 %v295_v39 }
 0x442   :  { %v1079_v40 = vpop.eup %1078 }
 0x443   :  { %v297_v41 = vmul.f32 %v1079_v40, %v295_v39  ;;  %vm303_vm5 = vweird.f32 %v1079_v40 }
 0x444   :  { %vm304_vm7 = vmor %vm302_vm6, %vm303_vm5 }
 0x445   :  { %v298_v42 = vmul.f32 %v1079_v40, %v297_v41 }
 0x447   :  { %v299_v43 = vmul.f32 0.5, %v298_v42 }
 0x449   :  { %v300_v44 = vsub.f32 1.5, %v299_v43 }
 0x44b   :  { %v301_v45 = vmul.f32 %v1079_v40, %v300_v44 }
 0x44d   :  { %v305_v47 = vsel %vm304_vm7, %v1079_v40, %v301_v45 }
 0x44e   :  { %v306_v48 = vmul.f32 %v305_v47, %v289_v30 }
 0x450   :  { %v308_v50 = vmul.f32 %v1053_v46, %v306_v48 }
 0x452   :  { %v310_v51 = vadd.f32 %v1054_v49, %v308_v50 }
 0x454   :  { %v311_v52 = vpack.c.bf16 %v310_v51, %v310_v51 }
 0x456   :  { %935 = vmatmul.msk.bf16.vlgmr.msrb.gmra.mxu1 %vm54_vm0, %v311_v52 }
 0x4d3   :  { %v337_v56 = vpop.f32.mrf.mxu1 }
 0x4d4   :  { %v338_v57 = vadd.f32 %v1055_v55, %v337_v56 }
 0x4d6   :  { %v341_v58 = vmax.f32 %v338_v57, 0.0 }
 0x4d8   :  { %v342_v59 = vpack.c.bf16 %v341_v58, %v341_v58 }
 0x4da   :  { %952 = vmatmul.msk.bf16.vlgmr.msra.gmra.mxu3 %vm368_vm8, %v342_v59 }
 0x4db   :  { %v339_v60 = vpop.f32.mrf.mxu1 }
 0x55d   :  { %v381_v62 = vpop.f32.mrf.mxu3 }
 0x55e   :  { %v382_v63 = vadd.f32 %v1056_v61, %v381_v62 }
 0x560   :  { %v385_v1 = vadd.f32 %v382_v63, %v310_v51 }
 0x562   :  { %v386_v4 = vsel %vm54_vm0, %v385_v1, 0.0 }
 0x563   :  { %387 = vadd.xlane.f32.xlu2 %v386_v4 }
 0x565   :  { %v383_v5 = vpop.f32.mrf.mxu3 }
 0x5d6   :  { %v388_v8 = vpop.xlane.xlu2 %387 }
 0x5d7   :  { %v389_v0 = vmul.f32 %v388_v8, %v1206_v27 }
 0x5d9   :  { %v390_v9 = vsub.f32 %v385_v1, %v389_v0 }
 0x5db   :  { %v391_v11 = vmul.f32 %v390_v9, %v390_v9 }
 0x5dd   :  { %v392_v10 = vsel %vm54_vm0, %v391_v11, 0.0 }
 0x5de   :  { %393 = vadd.xlane.f32.xlu1 %v392_v10 }
 0x651   :  { %v394_v14 = vpop.xlane.xlu1 %393 }
 0x652   :  { %v395_v15 = vmul.f32 %v394_v14, %v1206_v27 }
 0x654   :  { %v396_v16 = vadd.f32 1e-05, %v395_v15 }
 0x656   :  { %1080 = vrsqrt.f32 %v396_v16  ;;  %vm403_vm10 = vweird.f32 %v396_v16 }
 0x65c   :  { %v1081_v17 = vpop.eup %1080 }
 0x65d   :  { %v398_v18 = vmul.f32 %v1081_v17, %v396_v16  ;;  %vm404_vm9 = vweird.f32 %v1081_v17 }
 0x65e   :  { %vm405_vm11 = vmor %vm403_vm10, %vm404_vm9 }
 0x65f   :  { %v399_v19 = vmul.f32 %v1081_v17, %v398_v18 }
 0x661   :  { %v400_v20 = vmul.f32 0.5, %v399_v19 }
 0x663   :  { %v401_v21 = vsub.f32 1.5, %v400_v20 }
 0x665   :  { %v402_v22 = vmul.f32 %v1081_v17, %v401_v21 }
 0x667   :  { %v406_v24 = vsel %vm405_vm11, %v1081_v17, %v402_v22 }
 0x668   :  { %v407_v26 = vmul.f32 %v406_v24, %v390_v9 }
 0x66a   :  { %v409_v28 = vmul.f32 %v1057_v23, %v407_v26 }
 0x66c   :  { %v1267_v29 = vadd.f32 %v1058_v25, %v409_v28 }
 0x66e   :  { %v435_v30 = vpack.c.bf16 %v1267_v29, %v1267_v29  ;;  %v465_v31 = vpack.c.bf16 %v1129_v2, %v1267_v29 }
 0x670   :  { %961 = vmatmul.msk.bf16.vlgmr.msra.gmra.mxu2 %vm54_vm0, %v435_v30  ;;  %962 = vmatmul.msk.bf16.vlgmr.msrb.gmra.mxu0 %vm54_vm0, %v465_v31 }
 0x680   :  { %963 = vmatmul.msk.bf16.gmra.mxu0 %vm54_vm0, %v1153_v7 }
 0x6ed   :  { %v478_v3 = vpop.f32.mrf.mxu0 }
 0x6ee   :  { %v479_v35 = vadd.f32 %v1280_v32, %v478_v3 }
 0x6f3   :  { %v461_v33 = vpop.f32.mrf.mxu2 }
 0x6f4   :  { %v462_v43 = vadd.f32 %v1280_v32, %v461_v33 }
 0x6f5   :  { %v480_v34 = vpop.f32.mrf.mxu0 }
 0x6f6   :  { %v481_v36 = vadd.f32 %v1280_v32, %v480_v34  ;;  %v487_v44 = vpack.c.bf16 %v462_v43, %v462_v43 }
 0x6f8   :  { %v488_v38 = vpack.c.bf16 %v481_v36, %v479_v35 }
 0x6fa   :  { %558 = vrot.lane.b32.xlu2 %v488_v38, %s1094_s21  ;;  %492 = vrot.lane.b32.xlu0 %v488_v38, %s1095_s22 }
 0x6fb   :  { %v463_v39 = vpop.f32.mrf.mxu2 }
 0x6fd   :  { %v483_v40 = vpop.f32.mrf.mxu0 }
 0x6fe   :  { %v484_v7 = vadd.f32 %v1280_v32, %v483_v40 }
 0x700   :  { %v489_v41 = vpack.c.bf16 %v484_v7, %v484_v7 }
 0x702   :  { %494 = vrot.lane.b32.xlu1 %v489_v41, %s1095_s22  ;;  %531 = vrot.lane.b32.xlu0 %v489_v41, %s1097_s24 }
 0x705   :  { %v485_v42 = vpop.f32.mrf.mxu0 }
 0x70a   :  { %560 = vrot.lane.b32.xlu1 %v489_v41, %s1094_s21  ;;  %529 = vrot.lane.b32.xlu0 %v488_v38, %s1097_s24 }
 0x712   :  { %597 = vrot.lane.b32.xlu0 %v489_v41, %s1098_s25  ;;  %556 = vrot.lane.b32.xlu1 %v487_v44, %s1096_s23 }
 0x71a   :  { %595 = vrot.lane.b32.xlu0 %v488_v38, %s1098_s25 }
 0x754   :  { %v559_v54 = vpop.permute.xlu2 %558 }
 0x755   :  { %v566_v56 = vsel %vm106_vm1, %v559_v54, 0 }
 0x76c   :  { %v493_v45 = vpop.permute.xlu0 %492 }
 0x76d   :  { %v500_v52 = vsel %vm106_vm1, %v493_v45, 0 }
 0x774   :  { %v495_v46 = vpop.permute.xlu1 %494  ;;  %v532_v47 = vpop.permute.xlu0 %531 }
 0x775   :  { %v503_v48 = vsel %vm106_vm1, %v495_v46, 0  ;;  %v538_v49 = vsel %vm149_vm2, %v532_v47, 0 }
 0x776   :  { %511 = vmatpush.bf16.xpose.msra.mxu1 %v503_v48  ;;  %546 = vmatpush.bf16.msrb.mxu3 %v538_v49  ;;  %v1034_v48 = vld [vmem:[%s1405_s1 + $0x58] sm:$0xff] }
 0x777   :  { %714 = vmatpush.bf16.msra.mxu0 %v1034_v48  ;;  %v1038_v49 = vld [vmem:[%s1405_s1 + $0x78] sm:$0xff] }
 0x77c   :  { %v561_v50 = vpop.permute.xlu1 %560  ;;  %v530_v51 = vpop.permute.xlu0 %529 }
 0x77d   :  { %v569_v53 = vsel %vm106_vm1, %v561_v50, 0  ;;  %547 = vmatpush.bf16.msrb.mxu3 %v530_v51 }
 0x77e   :  { %512 = vmatpush.bf16.xpose.msra.mxu1 %v500_v52  ;;  %577 = vmatpush.bf16.xpose.msrb.mxu2 %v569_v53  ;;  %v1037_v52 = vld [vmem:[%s1405_s1 + $0x70] sm:$0xff] }
 0x784   :  { %v598_v55 = vpop.permute.xlu0 %597  ;;  %v557_v58 = vpop.permute.xlu1 %556 }
 0x785   :  { %v604_v57 = vsel %vm149_vm2, %v598_v55, 0  ;;  %964 = vmatmul.msk.bf16.vlgmr.msra.gmra.mxu1 %vm106_vm1, %v487_v44 }
 0x786   :  { %578 = vmatpush.bf16.xpose.msrb.mxu2 %v566_v56  ;;  %612 = vmatpush.bf16.msrb.mxu1 %v604_v57 }
 0x78c   :  { %v596_v59 = vpop.permute.xlu0 %595 }
 0x78d   :  { %966 = vmatmul.msk.bf16.vlgmr.msrb.gmra.mxu2 %vm106_vm1, %v557_v58  ;;  %613 = vmatpush.bf16.msrb.mxu1 %v596_v59 }
 0x791   :  { %755 = vmatpush.bf16.msra.mxu1 %v1038_v49 }
 0x795   :  { %756 = vmatpush.bf16.msra.mxu1 %v1037_v52  ;;  %v1067_v52 = vld [vmem:[%s1406_s0 + $0x31] ss:$0 sm:$0xff] }
 0x802   :  { %v514_v60 = vpop.f32.mrf.mxu1 }
 0x803   :  { %v515_v61 = vadd.f32 %v514_v60, %v1186_v37  ;;  %v1060_v60 = vld [vmem:[%s1406_s0 + $0x2b] ss:$0 sm:$0xff] }
 0x805   :  { %v518_v62 = vsel %vm129_vm3, %v515_v61, -inf }
 0x806   :  { %519 = vmax.xlane.f32.xlu1 %v518_v62  ;;  %v1061_v62 = vld [vmem:[%s1406_s0 + $0x2c] ss:$0 sm:$0xff] }
 0x80a   :  { %v516_v63 = vpop.f32.mrf.mxu1 }
 0x810   :  { %v580_v1 = vpop.f32.mrf.mxu2 }
 0x811   :  { %v581_v4 = vadd.f32 %v580_v1, %v1186_v37 }
 0x813   :  { %v584_v5 = vsel %vm129_vm3, %v581_v4, -inf }
 0x814   :  { %585 = vmax.xlane.f32.xlu2 %v584_v5 }
 0x818   :  { %v582_v8 = vpop.f32.mrf.mxu2 }
 0x819   :  { %v1036_v8 = vld [vmem:[%s1405_s1 + $0x68] sm:$0xff] }
 0x81a   :  { %757 = vmatpush.bf16.msra.mxu1 %v1036_v8 }
 0x82c   :  { %640 = vrot.lane.b32.xlu2 %v1256_v13, %s1099_s28 }
 0x879   :  { %v520_v0 = vpop.xlane.xlu1 %519 }
 0x87a   :  { %v521_v9 = vsub.f32 %v515_v61, %v520_v0  ;;  %v1035_v0 = vld [vmem:[%s1405_s1 + $0x60] sm:$0xff] }
 0x87b   :  { %758 = vmatpush.bf16.msra.mxu1 %v1035_v0 }
 0x87c   :  { %v522_v11 = vmul.f32 1.442695, %v521_v9  ;;  %v1062_v9 = vld [vmem:[%s1406_s0 + $0x29] ss:$0 sm:$0xff] }
 0x87e   :  { %1082 = vpow2.f32 %v522_v11 }
 0x884   :  { %v1083_v10 = vpop.eup %1082 }
 0x885   :  { %v528_v14 = vpack.c.bf16 %v1083_v10, %v1083_v10  ;;  %v524_v15 = vsel %vm129_vm3, %v1083_v10, 0.0 }
 0x886   :  { %525 = vadd.xlane.f32.xlu0 %v524_v15 }
 0x887   :  { %v586_v16 = vpop.xlane.xlu2 %585  ;;  %965 = vmatmul.msk.bf16.vlgmr.msrb.gmra.mxu3 %vm129_vm3, %v528_v14 }
 0x888   :  { %v587_v37 = vsub.f32 %v581_v4, %v586_v16 }
 0x88a   :  { %v588_v17 = vmul.f32 1.442695, %v587_v37  ;;  %v1063_v37 = vld [vmem:[%s1406_s0 + $0x2a] ss:$0 sm:$0xff] }
 0x88c   :  { %1084 = vpow2.f32 %v588_v17 }
 0x88f   :  { %v641_v13 = vpop.permute.xlu2 %640 }
 0x890   :  { %653 = vmatpush.bf16.msra.mxu2 %v641_v13 }
 0x892   :  { %v1085_v18 = vpop.eup %1084 }
 0x893   :  { %v594_v19 = vpack.c.bf16 %v1085_v18, %v1085_v18  ;;  %v590_v20 = vsel %vm129_vm3, %v1085_v18, 0.0 }
 0x894   :  { %591 = vadd.xlane.f32.xlu1 %v590_v20 }
 0x895   :  { %967 = vmatmul.msk.bf16.vlgmr.msrb.gmra.mxu1 %vm129_vm3, %v594_v19 }
 0x8ad   :  { %621 = vrot.lane.b32.xlu1 %v1249_v12, %s1099_s28 }
 0x8b5   :  { %660 = vrot.lane.b32.xlu1 %v1280_v32, %s1099_s28 }
 0x8f9   :  { %v526_v21 = vpop.xlane.xlu0 %525 }
 0x8fa   :  { %1086 = vrcp.f32 %v526_v21 }
 0x900   :  { %v1087_v22 = vpop.eup %1086 }
 0x907   :  { %v592_v30 = vpop.xlane.xlu1 %591 }
 0x908   :  { %1088 = vrcp.f32 %v592_v30  ;;  %v1044_v30 = vld [vmem:[%s1405_s1 + $0xa8] sm:$0xff] }
 0x909   :  { %869 = vmatpush.bf16.msrb.mxu2 %v1044_v30 }
 0x90a   :  { %v549_v23 = vpop.f32.mrf.mxu3 }
 0x90b   :  { %v553_v24 = vmul.f32 %v1087_v22, %v549_v23 }
 0x90d   :  { %v554_v25 = vpack.c.bf16 %v553_v24, %v553_v24 }
 0x90e   :  { %v1089_v3 = vpop.eup %1088 }
 0x90f   :  { %969 = vmatmul.msk.bf16.vlgmr.msra.gmra.mxu2 %vm106_vm1, %v554_v25 }
 0x912   :  { %v551_v26 = vpop.f32.mrf.mxu3  ;;  %v615_v28 = vpop.f32.mrf.mxu1 }
 0x913   :  { %v619_v12 = vmul.f32 %v1089_v3, %v615_v28  ;;  %v1040_v26 = vld [vmem:[%s1405_s1 + $0x88] sm:$0xff]  ;;  %v1039_v28 = vld [vmem:[%s1405_s1 + $0x80] sm:$0xff] }
 0x915   :  { %v620_v32 = vpack.c.bf16 %v619_v12, %v619_v12  ;;  %v1043_v12 = vld [vmem:[%s1405_s1 + $0xa0] sm:$0xff] }
 0x916   :  { %870 = vmatpush.bf16.msrb.mxu2 %v1043_v12 }
 0x91a   :  { %v617_v31 = vpop.f32.mrf.mxu1 }
 0x91f   :  { %v622_v33 = vpop.permute.xlu1 %621 }
 0x920   :  { %634 = vmatpush.bf16.msra.mxu3 %v622_v33 }
 0x923   :  { %968 = vmatmul.msk.bf16.vlgmr.msra.gmra.mxu3 %vm106_vm1, %v620_v32 }
 0x924   :  { %828 = vmatpush.bf16.msrb.mxu3 %v1040_v26 }
 0x927   :  { %v661_v38 = vpop.permute.xlu1 %660 }
 0x928   :  { %829 = vmatpush.bf16.msrb.mxu3 %v1039_v28 }
 0x992   :  { %v655_v34 = vpop.f32.mrf.mxu2 }
 0x99a   :  { %v657_v35 = vpop.f32.mrf.mxu2 }
 0x9a6   :  { %v636_v36 = vpop.f32.mrf.mxu3 }
 0x9a7   :  { %v656_v39 = vadd.f32 %v655_v34, %v636_v36 }
 0x9a9   :  { %v663_v40 = vadd.f32 %v661_v38, %v656_v39 }
 0x9ab   :  { %v664_v7 = vadd.f32 %v663_v40, %v1267_v29  ;;  %v1033_v29 = vld [vmem:[%s1405_s1 + $0x50] sm:$0xff] }
 0x9ac   :  { %715 = vmatpush.bf16.msra.mxu0 %v1033_v29 }
 0x9ad   :  { %v665_v41 = vsel %vm54_vm0, %v664_v7, 0.0 }
 0x9ae   :  { %v638_v42 = vpop.f32.mrf.mxu3  ;;  %666 = vadd.xlane.f32.xlu2 %v665_v41  ;;  %v1065_v41 = vld [vmem:[%s1406_s0 + $0x2e] ss:$0 sm:$0xff] }
 0xa21   :  { %v667_v43 = vpop.xlane.xlu2 %666 }
 0xa22   :  { %v668_v44 = vmul.f32 %v667_v43, %v1206_v27 }
 0xa24   :  { %v669_v45 = vsub.f32 %v664_v7, %v668_v44 }
 0xa26   :  { %v670_v46 = vmul.f32 %v669_v45, %v669_v45 }
 0xa28   :  { %v671_v47 = vsel %vm54_vm0, %v670_v46, 0.0  ;;  %v1041_v46 = vld [vmem:[%s1405_s1 + $0x90] sm:$0xff] }
 0xa29   :  { %672 = vadd.xlane.f32.xlu0 %v671_v47  ;;  %v1066_v47 = vld [vmem:[%s1406_s0 + $0x30] ss:$0 sm:$0xff] }
 0xa9c   :  { %v673_v50 = vpop.xlane.xlu0 %672 }
 0xa9d   :  { %v674_v51 = vmul.f32 %v673_v50, %v1206_v27 }
 0xa9f   :  { %v675_v53 = vadd.f32 1e-05, %v674_v51 }
 0xaa1   :  { %1090 = vrsqrt.f32 %v675_v53  ;;  %vm682_vm13 = vweird.f32 %v675_v53 }
 0xaa7   :  { %v1091_v54 = vpop.eup %1090 }
 0xaa8   :  { %v677_v55 = vmul.f32 %v1091_v54, %v675_v53  ;;  %vm683_vm12 = vweird.f32 %v1091_v54 }
 0xaa9   :  { %vm684_vm14 = vmor %vm682_vm13, %vm683_vm12 }
 0xaaa   :  { %v678_v56 = vmul.f32 %v1091_v54, %v677_v55 }
 0xaac   :  { %v679_v57 = vmul.f32 0.5, %v678_v56 }
 0xaae   :  { %v680_v58 = vsub.f32 1.5, %v679_v57 }
 0xab0   :  { %v681_v59 = vmul.f32 %v1091_v54, %v680_v58  ;;  %v16_v58 = vpack.c.bf16 %v1149_v6, %v1129_v2 }
 0xab2   :  { %v685_v61 = vsel %vm684_vm14, %v1091_v54, %v681_v59 }
 0xab3   :  { %v686_v63 = vmul.f32 %v685_v61, %v669_v45  ;;  %v1042_v45 = vld [vmem:[%s1405_s1 + $0x98] sm:$0xff] }
 0xab4   :  { %871 = vmatpush.bf16.msrb.mxu2 %v1042_v45 }
 0xab5   :  { %v688_v1 = vmul.f32 %v1060_v60, %v686_v63 }
 0xab7   :  { %v690_v4 = vadd.f32 %v1061_v62, %v688_v1 }
 0xab8   :  { %872 = vmatpush.bf16.msrb.mxu2 %v1041_v46 }
 0xab9   :  { %v691_v5 = vpack.c.bf16 %v690_v4, %v690_v4 }
 0xabb   :  { %978 = vmatmul.msk.bf16.vlgmr.msra.gmra.mxu0 %vm54_vm0, %v691_v5 }
 0xb38   :  { %v717_v11 = vpop.f32.mrf.mxu0 }
 0xb39   :  { %v718_v10 = vadd.f32 %v1062_v9, %v717_v11 }
 0xb3b   :  { %v721_v14 = vmax.f32 %v718_v10, 0.0 }
 0xb3d   :  { %v722_v15 = vpack.c.bf16 %v721_v14, %v721_v14 }
 0xb3f   :  { %995 = vmatmul.msk.bf16.vlgmr.msra.gmra.mxu1 %vm368_vm8, %v722_v15 }
 0xb40   :  { %v719_v16 = vpop.f32.mrf.mxu0 }
 0xbbc   :  { %v760_v17 = vpop.f32.mrf.mxu1 }
 0xbbd   :  { %v761_v18 = vadd.f32 %v1063_v37, %v760_v17 }
 0xbbf   :  { %v764_v19 = vadd.f32 %v761_v18, %v690_v4 }
 0xbc1   :  { %v765_v20 = vsel %vm54_vm0, %v764_v19, 0.0 }
 0xbc2   :  { %766 = vadd.xlane.f32.xlu1 %v765_v20 }
 0xbc4   :  { %v762_v13 = vpop.f32.mrf.mxu1 }
 0xc35   :  { %v767_v21 = vpop.xlane.xlu1 %766 }
 0xc36   :  { %v768_v22 = vmul.f32 %v767_v21, %v1206_v27 }
 0xc38   :  { %v769_v23 = vsub.f32 %v764_v19, %v768_v22 }
 0xc3a   :  { %v770_v24 = vmul.f32 %v769_v23, %v769_v23 }
 0xc3c   :  { %v771_v25 = vsel %vm54_vm0, %v770_v24, 0.0 }
 0xc3d   :  { %772 = vadd.xlane.f32.xlu0 %v771_v25 }
 0xcb0   :  { %v773_v31 = vpop.xlane.xlu0 %772 }
 0xcb1   :  { %v774_v3 = vmul.f32 %v773_v31, %v1206_v27  ;;  %v1064_v27 = vld [vmem:[%s1406_s0 + $0x2d] ss:$0 sm:$0xff] }
 0xcb3   :  { %v775_v33 = vadd.f32 1e-05, %v774_v3 }
 0xcb5   :  { %1092 = vrsqrt.f32 %v775_v33  ;;  %vm782_vm1 = vweird.f32 %v775_v33 }
 0xcbb   :  { %v1093_v32 = vpop.eup %1092 }
 0xcbc   :  { %v777_v34 = vmul.f32 %v1093_v32, %v775_v33  ;;  %vm783_vm15 = vweird.f32 %v1093_v32 }
 0xcbd   :  { %vm784_vm2 = vmor %vm782_vm1, %vm783_vm15 }
 0xcbe   :  { %v778_v35 = vmul.f32 %v1093_v32, %v777_v34 }
 0xcc0   :  { %v779_v36 = vmul.f32 0.5, %v778_v35 }
 0xcc2   :  { %v780_v38 = vsub.f32 1.5, %v779_v36 }
 0xcc4   :  { %v781_v39 = vmul.f32 %v1093_v32, %v780_v38 }
 0xcc6   :  { %v785_v40 = vsel %vm784_vm2, %v1093_v32, %v781_v39 }
 0xcc7   :  { %v786_v7 = vmul.f32 %v785_v40, %v769_v23 }
 0xcc9   :  { %v788_v42 = vmul.f32 %v1064_v27, %v786_v7 }
 0xccb   :  { %v790_v43 = vadd.f32 %v1065_v41, %v788_v42 }
 0xccd   :  { %v805_v44 = vpack.c.bf16 %v790_v43, %v790_v43 }
 0xccf   :  { %1004 = vmatmul.msk.bf16.vlgmr.msrb.gmra.mxu3 %vm54_vm0, %v805_v44 }
 0xd52   :  { %v831_v48 = vpop.f32.mrf.mxu3 }
 0xd53   :  { %v832_v29 = vadd.f32 %v1066_v47, %v831_v48 }
 0xd55   :  { %v835_v49 = vmax.f32 %v832_v29, 0.0 }
 0xd57   :  { %v836_v50 = vpack.c.bf16 %v835_v49, %v835_v49 }
 0xd59   :  { %1021 = vmatmul.msk.bf16.vlgmr.msrb.gmra.mxu2 %vm368_vm8, %v836_v50 }
 0xd5a   :  { %v833_v51 = vpop.f32.mrf.mxu3 }
 0xddc   :  { %v874_v53 = vpop.f32.mrf.mxu2 }
 0xddd   :  { %v875_v54 = vadd.f32 %v1067_v52, %v874_v53 }
 0xddf   :  { %878 = vst [vmem:[%s1407_s2] sm:$0xff] %v875_v54  ;;  %v879_v55 = vpack.c.bf16 0.0, %v875_v54 }
 0xde1   :  { %v885_v56 = vsel %vm54_vm0, %v879_v55, 0 }
 0xde2   :  { %897 = vmatpush.bf16.xpose.msrb.mxu0 %v885_v56 }
 0xde4   :  { %v876_v57 = vpop.f32.mrf.mxu2 }
 0xde9   :  { %1022 = vmatmul.msk.bf16.vlgmr.msrb.gmra.mxu0 %vm54_vm0, %v16_v58 }
 0xe66   :  { %v899_v59 = vpop.f32.mrf.mxu0 }
 0xe67   :  { %904 = vst [vmem:[%s1407_s2 + $0x8] sm:$0xff] %v899_v59 }
 0xe6e   :  { %v901_v60 = vpop.f32.mrf.mxu0 }
 0xe6f   :  { %905 = vst [vmem:[%s1407_s2 + $0x10] sm:$0xff] %v901_v60 }

</bundles_post_ra>
